<compile_context>
chip_gen: v7x
topology: tpu7x:2x2x1
jax: 0.10.0
libtpu: 0.0.40
codegen_flags: <defaults>
</compile_context>

<pallas_src>
import jax
import jax.numpy as jnp
import numpy as np
from jax.experimental import pallas as pl
from jax.experimental.pallas import tpu as pltpu


def _feature_noise_kernel(factor_ref, x_ref, o_ref):
    # factor_ref broadcasts against the x tile: same (tr, tl) shape in the 3-D
    # path, (1, tf) in the 2-D fallback.  Pure vld -> vmul -> vst stream.
    o_ref[...] = x_ref[...] * factor_ref[...]


def _round_down(v, m):
    return max(m, (v // m) * m)


def _tpu_memory_config():
    """(tile_budget_bytes, vmem_limit_bytes) per TPU generation."""
    kind = ""
    try:
        kind = jax.devices()[0].device_kind.lower()
    except Exception:
        pass
    if "v7" in kind or "tpu7" in kind:
        # 64 MiB physical VMEM per core: large tiles, but comfortable headroom.
        return 16 << 20, 48 << 20
    if "v6" in kind or "trillium" in kind:
        # 128 MiB physical VMEM, fast HBM: big tiles amortize the ~0.35 us/step.
        return 32 << 20, 64 << 20
    if "v5 lite" in kind or "v5e" in kind or "v5lite" in kind:
        # 16 MiB default scoped VMEM, slowest HBM: small tiles are fine there.
        return 12 << 20, 32 << 20
    # Unknown / older generations: conservative.
    return 12 << 20, 32 << 20


def _split_features(f, lane_cap, min_rows):
    """Factor f = rows * lanes, lanes a multiple of 128 and <= lane_cap.

    Prefers the largest `lanes` that still leaves rows >= min_rows so vregs are
    filled on both the sublane and lane axes.  Returns (1, f) when f is not a
    multiple of 128 (caller uses the 2-D fallback tiling instead).
    """
    if f % 128 != 0:
        return 1, f
    limit = min(f, lane_cap)
    best_any, best_good = 128, 0
    l = 128
    while l <= limit:
        if f % l == 0:
            best_any = l
            if f // l >= min_rows:
                best_good = l
        l += 128
    lanes = best_good if best_good else best_any
    return f // lanes, lanes


def feature_noise(x_nchw, key, uniform_range=0.3):
    """out = x * (1 + U(-r, r)), noise shared across the batch dimension."""
    n, c, h, w = x_nchw.shape
    f = c * h * w
    dtype = x_nchw.dtype
    itemsize = jnp.dtype(dtype).itemsize
    sub = 8 if itemsize >= 4 else (16 if itemsize == 2 else 32)

    noise = jax.random.uniform(key, (f,), dtype=jnp.float32,
                               minval=-uniform_range, maxval=uniform_range)
    # x * noise + x == x * (1 + noise); precompute + cast the tiny factor once
    # so the kernel is a single multiply and the factor DMA is halved for
    # 16-bit activations.
    factor = (jnp.float32(1.0) + noise).astype(dtype)

    budget, vmem_limit = _tpu_memory_config()
    cost = pl.CostEstimate(
        flops=n * f,
        transcendentals=0,
        bytes_accessed=(2 * n * f + f) * itemsize,
    )

    rows, lanes = _split_features(f, lane_cap=4096, min_rows=sub)

    if rows > 1:
        # ---- 3-D path: x as (N, rows, lanes), factor as (rows, lanes). ----
        x3 = x_nchw.reshape(n, rows, lanes)
        fac = factor.reshape(rows, lanes)

        # x, out and factor tiles are all (tr, tl); each is double-buffered.
        max_elems = max(budget // (6 * itemsize), sub * 128)
        tl = min(lanes, 4096)                      # lanes (and so tl) % 128 == 0
        tr = rows if rows <= sub else _round_down(min(rows, max_elems // tl), sub)

        # Batch innermost: factor block index is constant across consecutive
        # batch steps -> Pallas keeps the factor tile resident (no re-fetch).
        grid = (pl.cdiv(rows, tr), pl.cdiv(lanes, tl), n)

        out = pl.pallas_call(
            _feature_noise_kernel,
            out_shape=jax.ShapeDtypeStruct((n, rows, lanes), dtype),
            grid=grid,
            in_specs=[
                pl.BlockSpec((tr, tl), lambda i, j, b: (i, j)),           # factor
                pl.BlockSpec((None, tr, tl), lambda i, j, b: (b, i, j)),  # x
            ],
            out_specs=pl.BlockSpec((None, tr, tl), lambda i, j, b: (b, i, j)),
            compiler_params=pltpu.CompilerParams(
                dimension_semantics=("parallel", "parallel", "parallel"),
                vmem_limit_bytes=vmem_limit),
            cost_estimate=cost,
        )(fac, x3)
        return out.reshape(n, c, h, w)

    # ---- 2-D fallback (F not 128-aligned or too small to split): fixed
    # aligned feature tile + cdiv grid; Pallas masks the ragged last block so
    # the VMEM footprint stays bounded no matter how awkward F is. ----
    x2 = x_nchw.reshape(n, f)
    fac = factor.reshape(1, f)

    max_elems = max(budget // (4 * itemsize), sub * 128)
    tf = f if f <= 2048 else 2048                  # full extent or 128-aligned
    tn = n if n <= sub else _round_down(min(n, max_elems // tf), sub)
    grid = (pl.cdiv(n, tn), pl.cdiv(f, tf))

    out = pl.pallas_call(
        _feature_noise_kernel,
        out_shape=jax.ShapeDtypeStruct((n, f), dtype),
        grid=grid,
        in_specs=[
            pl.BlockSpec((1, tf), lambda i, j: (0, j)),    # factor (broadcast)
            pl.BlockSpec((tn, tf), lambda i, j: (i, j)),   # x
        ],
        out_specs=pl.BlockSpec((tn, tf), lambda i, j: (i, j)),
        compiler_params=pltpu.CompilerParams(
            dimension_semantics=("parallel", "parallel"),
            vmem_limit_bytes=vmem_limit),
        cost_estimate=cost,
    )(fac, x2)
    return out.reshape(n, c, h, w)


if __name__ == "__main__":
    root = jax.random.PRNGKey(0)
    k_x, k_noise = jax.random.split(root)

    # Small NCHW feature map consistent with the module: (N, C, H, W).
    x = jax.random.normal(k_x, (2, 4, 16, 16), dtype=jnp.float32)

    y = feature_noise(x, k_noise, uniform_range=0.3)
    y = jax.block_until_ready(y)

    # Reference: same deterministic noise draw, dense broadcast math.
    n, c, h, w = x.shape
    f = c * h * w
    noise = jax.random.uniform(k_noise, (f,), dtype=jnp.float32,
                               minval=-0.3, maxval=0.3)
    ref = (x.reshape(n, f) * (1.0 + noise)[None, :]).reshape(n, c, h, w)

    np.testing.assert_allclose(np.asarray(y), np.asarray(ref),
                               rtol=1e-6, atol=1e-6)

    # Sanity: factor shared across batch lies in [1 - 0.3, 1 + 0.3).
    fac_np = np.asarray(1.0 + noise)
    assert fac_np.min() > 0.7 - 1e-6 and fac_np.max() < 1.3 + 1e-6, \
        "noise out of uniform range"

    print("KERNEL_OK")
</pallas_src>

<mosaic_0001>
module attributes {stable_mosaic.version = 11 : i64} {
  func.func @_feature_noise_kernel(%arg0: i32, %arg1: i32, %arg2: i32, %arg3: memref<8x128xf32, #tpu.memory_space<vmem>>, %arg4: memref<1x8x128xf32, #tpu.memory_space<vmem>>, %arg5: memref<1x8x128xf32, #tpu.memory_space<vmem>>) attributes {dimension_semantics = [#tpu.dimension_semantics<parallel>, #tpu.dimension_semantics<parallel>, #tpu.dimension_semantics<parallel>], iteration_bounds = array<i64: 1, 1, 2>, scalar_prefetch = 0 : i64, scratch_operands = 0 : i64, tpu.core_type = #tpu.core_type<tc>, window_params = [{transform_indices = @transform_0, window_bounds = array<i64: 8, 128>}, {transform_indices = @transform_1, window_bounds = array<i64: 1, 8, 128>}, {transform_indices = @transform_2, window_bounds = array<i64: 1, 8, 128>}]} {
    %c0 = arith.constant 0 : index
    %c0_0 = arith.constant 0 : index
    %c0_1 = arith.constant 0 : index
    %0 = vector.load %arg4[%c0, %c0_0, %c0_1] : memref<1x8x128xf32, #tpu.memory_space<vmem>>, vector<1x8x128xf32>
    %1 = vector.shape_cast %0 : vector<1x8x128xf32> to vector<8x128xf32>
    %c0_2 = arith.constant 0 : index
    %c0_3 = arith.constant 0 : index
    %2 = vector.load %arg3[%c0_2, %c0_3] : memref<8x128xf32, #tpu.memory_space<vmem>>, vector<8x128xf32>
    %3 = arith.mulf %1, %2 : vector<8x128xf32>
    %c0_4 = arith.constant 0 : index
    %c0_5 = arith.constant 0 : index
    %c0_6 = arith.constant 0 : index
    %4 = vector.load %arg5[%c0_4, %c0_5, %c0_6] : memref<1x8x128xf32, #tpu.memory_space<vmem>>, vector<1x8x128xf32>
    %5 = vector.shape_cast %4 : vector<1x8x128xf32> to vector<8x128xf32>
    %6 = vector.shape_cast %3 : vector<8x128xf32> to vector<1x8x128xf32>
    tpu.vector_store %arg5[%c0_4, %c0_5, %c0_6], %6 {strides = array<i32>} : memref<1x8x128xf32, #tpu.memory_space<vmem>>, vector<1x8x128xf32>,
    return
  }
  func.func @transform_0(%arg0: i32, %arg1: i32, %arg2: i32) -> (i32, i32) {
    %c0_i32 = arith.constant 0 : i32
    return %arg0, %arg1 : i32, i32
  }
  func.func @transform_1(%arg0: i32, %arg1: i32, %arg2: i32) -> (i32, i32, i32) {
    %c0_i32 = arith.constant 0 : i32
    return %arg2, %arg0, %arg1 : i32, i32, i32
  }
  func.func @transform_2(%arg0: i32, %arg1: i32, %arg2: i32) -> (i32, i32, i32) {
    %c0_i32 = arith.constant 0 : i32
    return %arg2, %arg0, %arg1 : i32, i32, i32
  }
}

</mosaic_0001>

<bundles_post_ra>
// kernel: tpu_custom_call.1
= control target key start
LH: loop header
LB: loop body
LE: loop exit
PB: predicated region body
PF: predicated region fallthrough
CT: control target
= control target key end

     0   :  { %7 = vsyncpa [#allocation3], 0  ;;  %s799_s0 = inlined_call_operand.hbm [shape: f32[8,128], index: 0, kind: input, shape index: {}]   ;;  %s800_s1 = inlined_call_operand.hbm [shape: f32[2,8,128], index: 1, kind: input, shape index: {}]   ;;  %s801_s2 = inlined_call_operand.hbm [shape: f32[2,8,128], index: 2, kind: output, shape index: {}]  }
   0x1   :  { %8 = vsyncpa [#allocation6], 0 }
   0x2   :  { %10 = vsyncpa [#allocation6 + $0x1], 0 }
   0x3   :  { %11 = vsyncpa [#allocation4], 0 }
   0x4   :  { %13 = vsyncpa [#allocation4 + $0x1], 0  ;;  %s583_s9 = smov 0   ;;  %s585_s10 = smov 0  }
   0x5   :  { %s587_s11 = smov 0   ;;  %s589_s12 = smov 0  }
   0x6   :  { %s591_s13 = smov 0   ;;  %s593_s14 = smov 0  }
   0x7 LB: > { %s331_s15 = sadd.s32 4294967295, %s563_s14   ;;  %s332_s16 = sadd.s32 4294967294, %s563_s14   ;;  %s563_s14 = sphi %s593_s14, %s19_s14   ;;  %s559_s13 = sphi %s591_s13, %s826_s13   ;;  %s555_s12 = sphi %s589_s12, %s825_s12   ;;  %s551_s11 = sphi %s587_s11, %s824_s11   ;;  %s547_s10 = sphi %s585_s10, %s823_s10   ;;  %s543_s9 = sphi %s583_s9, %s822_s9  }
   0x8   : > { %p90_p0 = scmp.ne.s32.totalorder %s547_s10, %s543_s9  ;;  %p617_p1 = scmp.eq.s32.totalorder %s331_s15, 0 }
   0x9   : > { %p621_p2 = scmp.eq.s32.totalorder %s331_s15, 1  ;;  %p124_p3 = scmp.eq.s32.totalorder %s332_s16, 1 }
   0xa   : > { %s806_s17 = scalar_select %p617_p1, 1, 0 }
   0xb   : > { %s807_s18 = scalar_select %p621_p2, 1, 0 }
   0xc   : > { %p627_p4 = por %p617_p1, %p90_p0  ;;  %p333_p5 = scmp.ge.s32.totalorder %s563_s14, 1 }
   0xd   : > { %p632_p6 = por %p124_p3, %p90_p0  ;;  %p131_p7 = scmp.lt.s32.totalorder %s563_s14, 3 }
   0xe   : > { %s808_s19 = scalar_select %p627_p4, 1, 0 }
   0xf   : > { %s809_s20 = scalar_select %p632_p6, 1, 0 }
  0x10   : > { %p637_p8 = pnand %p333_p5, %p131_p7  ;;  %s565_s22 = smov [#allocation2]  }
  0x11   : > { %s147_s23 = sshll.u32 %s565_s22, 4  ;;  %s31_s25 = sadd.s32 1, %s559_s13  ;;  %s148_s23 = int_to_ptr.vmem [resolvable:$true] %s147_s23 }
  0x12   : > { %s810_s21 = scalar_select %p637_p8, 1, 0 }
  0x13   : > { %p354_p10 = pneg %p637_p8  ;;  %s77_s26 = sadd.s32 1, %s551_s11 }
  0x14   : > { %p652_p12 = scmp.ge.s32.totalorder %s31_s25, 2  ;;  %s419_s30 = scalar_lea.hbm %s799_s0, 128 }
  0x15   : > { %p646_p11 = pnand %p354_p10, %p617_p1  ;;  %p420_p13 = scmp.ne.s32.totalorder %s799_s0, %s419_s30 }
  0x16   : > { %s812_s27 = scalar_select %p652_p12, 1, 0 }
  0x17   : > { %p421_p0 = pneg %p646_p11  ;;  %p426_p7 = scmp.lt.u32.totalorder %s419_s30, %s799_s0 }
  0x19   : > { %p422_p3 = pnand %p421_p0, %p420_p13 }
  0x1b   : > { %p423_p5 = pneg %p422_p3 }
  0x1d   : > { %p428_p10 = pnand %p426_p7, %p423_p5 }
  0x1f   : > { %431 = shalt.err (!%p428_p10)
}
  0x20   : > { %s432_s7 = scalar_lea.vmem %s148_s23, 128  ;;  %p440_p1 = scmp.lt.s32.totalorder %s148_s23, %s148_s23 }
  0x21   : > { %p433_p9 = scmp.ne.s32.totalorder %s148_s23, %s432_s7  ;;  %p441_p8 = scmp.lt.s32.totalorder %s432_s7, %s432_s7 }
  0x23   : > { %p435_p6 = pnand %p433_p9, %p421_p0  ;;  %p442_p2 = por %p441_p8, %p440_p1 }
  0x25   : > { %p436_p4 = pneg %p435_p6 }
  0x27   : > { %p443_p12 = pnand %p442_p2, %p436_p4 }
  0x29   : > { %446 = shalt.err (!%p443_p12)
}
  0x2a   : > { %357 = dma.hbm_to_vmem [thread:$0]  (!%p646_p11), %s799_s0, 128, %s148_s23, [#allocation3]  }
  0x2b   : > { %p813_p1 = scmp.ne.s32.totalorder %s812_s27, 0  ;;  %p84_p2 = scmp.ne.s32.totalorder %s551_s11, %s547_s10 }
  0x2c   : > { %p85_p4 = scmp.eq.s32.totalorder %s563_s14, 0  ;;  %p367_p6 = scmp.lt.s32.totalorder %s563_s14, 2 }
  0x2d   : > { %s828_s25 = smov (%p813_p1, %s31_s25), 0  ;;  %p814_p12 = scmp.ne.s32.totalorder %s807_s18, 0 }
  0x2e   : > { %s70_s16 = ssub.s32 %s559_s13, %s828_s25  ;;  %p86_p9 = por %p85_p4, %p84_p2 }
  0x2f   : > { %p75_p8 = scmp.eq.s32.totalorder %s70_s16, 0  ;;  %p684_p13 = por %p814_p12, %p84_p2 }
  0x30   : > { %s158_s24 = sand.u32 1, %s551_s11   ;;  %s337_s27 = sshll.u32 %s559_s13, 7 }
  0x31   : > { %s692_s28 = scalar_select %p75_p8, %s551_s11, %s77_s26  }
  0x32   : > { %s336_s23 = sshll.u32 %s158_s24, 3  ;;  %s698_s3 = scalar_lea.hbm %s800_s1, %s337_s27 }
  0x33   : > { %s162_s18 = scalar_lea.vmem [#allocation5], %s336_s23  ;;  %p702_p11 = pnand %p367_p6, %p86_p9 }
  0x34   : > { %s171_s4 = sshll.u32 %s162_s18, 4  ;;  %s159_s26 = scalar_lea.sflag [#allocation6], %s158_s24  ;;  %s700_s4 = int_to_ptr.vmem [resolvable:$true] %s171_s4 }
  0x35   : > { %s447_s6 = scalar_lea.hbm %s698_s3, 128  ;;  %p449_p3 = pneg %p702_p11 }
  0x36   : > { %p448_p0 = scmp.ne.s32.totalorder %s698_s3, %s447_s6  ;;  %s452_s15 = scalar_lea.hbm %s800_s1, 256 }
  0x37   : > { %p453_p10 = scmp.lt.u32.totalorder %s698_s3, %s800_s1  ;;  %p454_p1 = scmp.lt.u32.totalorder %s452_s15, %s447_s6 }
  0x38   : > { %p450_p5 = pnand %p449_p3, %p448_p0  ;;  %p456_p4 = scmp.lt.u32.totalorder %s447_s6, %s698_s3 }
  0x39   : > { %p455_p2 = por %p454_p1, %p453_p10 }
  0x3a   : > { %p451_p7 = pneg %p450_p5 }
  0x3b   : > { %p457_p6 = por %p456_p4, %p455_p2 }
  0x3d   : > { %p458_p8 = pnand %p457_p6, %p451_p7 }
  0x3f   : > { %461 = shalt.err (!%p458_p8)
}
  0x40   : > { %s462_s24 = scalar_lea.vmem %s700_s4, 128  ;;  %s566_s27 = smov [#allocation5]  }
  0x41   : > { %p463_p9 = scmp.ne.s32.totalorder %s700_s4, %s462_s24  ;;  %s467_s29 = sshll.u32 %s566_s27, 4  ;;  %s468_s29 = int_to_ptr.vmem [resolvable:$false] %s467_s29 }
  0x42   : > { %s469_s30 = scalar_lea.vmem %s468_s29, 256  ;;  %p470_p5 = scmp.lt.s32.totalorder %s700_s4, %s468_s29 }
  0x43   : > { %p465_p12 = pnand %p463_p9, %p449_p3  ;;  %p471_p10 = scmp.lt.s32.totalorder %s469_s30, %s462_s24 }
  0x45   : > { %p466_p0 = pneg %p465_p12  ;;  %p472_p1 = por %p471_p10, %p470_p5 }
  0x47   : > { %p473_p2 = pnand %p472_p1, %p466_p0 }
  0x49   : > { %476 = shalt.err (!%p473_p2)
}
  0x4a   : > { %361 = dma.hbm_to_vmem [thread:$0]  (!%p702_p11), %s698_s3, 128, %s700_s4, %s159_s26  }
  0x4b   : > { %p817_p7 = scmp.ne.s32.totalorder %s810_s21, 0 }
  0x4c   : > { %p818_p3 = scmp.ne.s32.totalorder (!%p817_p7), %s806_s17, 0 }
  0x4d   : > { %180 = sbr.rel (%p817_p7) target bundleno = 114 (0x72), region = 28 }
  0x54   : > { %530 = dma.done.wait (%p818_p3), [#allocation3], 128  }
  0x55   : > { %532 = vsyncadd (%p818_p3), [#allocation3], 4294967168  ;;  %s738_s18 = sand.u32 1, %s547_s10   ;;  %p819_p4 = scmp.ne.s32.totalorder %s808_s19, 0 }
  0x56   : > { %s340_s6 = sshll.u32 %s738_s18, 3  ;;  %s187_s5 = scalar_lea.sflag [#allocation6], %s738_s18 }
  0x57   : > { %s190_s7 = scalar_lea.vmem [#allocation5], %s340_s6 }
  0x58   : > { %534 = dma.done.wait (%p819_p4), %s187_s5, 128  }
  0x59   : > { %536 = vsyncadd (%p819_p4), %s187_s5, 4294967168  ;;  %s210_s21 = scalar_lea.vmem [#allocation7], %s340_s6  ;;  %s343_s3 = sshll.u32 %s555_s12, 7  ;;  %v211_v0 = vld [vmem:[%s190_s7] sm:$0xff]  ;;  %v212_v1 = vld [vmem:[#allocation2] sm:$0xff] }
  0x5a   : > { %s231_s17 = sshll.u32 %s210_s21, 4  ;;  %v213_v2 = vmul.f32 %v212_v1, %v211_v0  ;;  %s752_s8 = scalar_lea.hbm %s801_s2, %s343_s3  ;;  %s747_s17 = int_to_ptr.vmem [resolvable:$true] %s231_s17 }
  0x5b   : > { %s216_s19 = scalar_lea.sflag [#allocation4], %s738_s18  ;;  %s477_s15 = scalar_lea.vmem %s747_s17, 128 }
  0x5c   : > { %214 = vst [vmem:[%s210_s21] sm:$0xff] %v213_v2  ;;  %p478_p11 = scmp.ne.s32.totalorder %s747_s17, %s477_s15  ;;  %s567_s12 = smov [#allocation7]  }
  0x5d   : > { %s481_s16 = sshll.u32 %s567_s12, 4  ;;  %s482_s16 = int_to_ptr.vmem [resolvable:$false] %s481_s16 }
  0x5e   : > { %p479_p6 = pnand %p478_p11, %p684_p13  ;;  %s483_s23 = scalar_lea.vmem %s482_s16, 256 }
  0x5f   : > { %p484_p9 = scmp.lt.s32.totalorder %s747_s17, %s482_s16  ;;  %p485_p12 = scmp.lt.s32.totalorder %s483_s23, %s477_s15 }
  0x60   : > { %p480_p8 = pneg %p479_p6 }
  0x61   : > { %p486_p0 = por %p485_p12, %p484_p9 }
  0x63   : > { %p487_p5 = pnand %p486_p0, %p480_p8 }
  0x65   : > { %490 = shalt.err (!%p487_p5)
}
  0x66   : > { %s491_s24 = scalar_lea.hbm %s752_s8, 128  ;;  %s495_s30 = scalar_lea.hbm %s801_s2, 256 }
  0x67   : > { %p492_p10 = scmp.ne.s32.totalorder %s752_s8, %s491_s24  ;;  %p496_p7 = scmp.lt.u32.totalorder %s752_s8, %s801_s2 }
  0x68   : > { %p497_p3 = scmp.lt.u32.totalorder %s495_s30, %s491_s24  ;;  %p499_p11 = scmp.lt.u32.totalorder %s491_s24, %s752_s8 }
  0x69   : > { %p493_p1 = pnand %p492_p10, %p684_p13 }
  0x6a   : > { %p498_p4 = por %p497_p3, %p496_p7 }
  0x6b   : > { %p494_p2 = pneg %p493_p1 }
  0x6c   : > { %p500_p6 = por %p499_p11, %p498_p4 }
  0x6e   : > { %p501_p8 = pnand %p500_p6, %p494_p2 }
  0x70   : > { %504 = shalt.err (!%p501_p8)
}
  0x71   : > { %352 = dma.vmem_to_hbm [thread:$0]  (%p684_p13), %s747_s17, 128, %s752_s8, %s216_s19  }
  0x72 PF: > { %s243_s5 = sand.u32 1, %s543_s9   ;;  %p820_p9 = scmp.ne.s32.totalorder %s809_s20, 0 }
  0x73   : > { %p821_p12 = scmp.ge.s32.totalorder %s563_s14, 2  ;;  %s244_s7 = scalar_lea.sflag [#allocation4], %s243_s5 }
  0x75   : > { %p363_p0 = pnand %p821_p12, %p820_p9 }
  0x77   : > { %538 = dma.done.wait (!%p363_p0), %s244_s7, 128  }
  0x78   : > { %540 = vsyncadd (!%p363_p0), %s244_s7, 4294967168  ;;  %s19_s14 = sadd.s32 1, %s563_s14   ;;  %s822_s9 = smov %s547_s10 }
  0x79   : > { %p16_p5 = scmp.ge.s32.totalorder %s19_s14, 4   ;;  %s823_s10 = smov %s551_s11 }
  0x7a   : > { %s824_s11 = smov %s692_s28  ;;  %s825_s12 = smov %s559_s13 }
  0x7b   : > { %s826_s13 = smov %s828_s25  ;;  %18 = sbr.rel (!%p16_p5) target bundleno = 7 (0x7), region = 79 }
  0x82   :  { %249 = vsyncpa [#allocation3], 1 }
  0x83   :  { %251 = vsyncpa [#allocation3 + $0x1], 1 }
  0x84   :  { %252 = vsyncpa [#allocation6], 1 }
  0x85   :  { %254 = vsyncpa [#allocation6 + $0x1], 1 }
  0x86   :  { %255 = vsyncpa [#allocation4], 1 }
  0x87   :  { %257 = vsyncpa [#allocation4 + $0x1], 1 }

</bundles_post_ra>
